<compile_context>
chip_gen: v7x
topology: tpu7x:2x2x1
jax: 0.10.0
libtpu: 0.0.40
codegen_flags: <defaults>
</compile_context>

<pallas_src>
import functools

import jax
import jax.numpy as jnp
from jax.experimental import pallas as pl
from jax.experimental.pallas import tpu as pltpu

FEAT_PAD = 128   # lane-dense feature padding (128-lane vregs / MXU width)
NODE_PAD = 128   # node-count padding (keeps A's lane dim 128-dense)


def _round_up(x, m):
    return ((x + m - 1) // m) * m


def _pad2(x, shape):
    return jnp.pad(x, [(0, t - s) for s, t in zip(x.shape, shape)])


# ----------------------------- Pallas kernel -------------------------------

def _gin_forward_kernel(a_ref, x_ref, w_ref, b_ref, out_ref, *, eps1, eps2):
    """Fused 2-layer GIN forward (whole graph VMEM-resident).

    a_ref:   (Np, Np)    bf16  sum-aggregation adjacency, A[i, j] = #edges j->i
    x_ref:   (Np, Fp)    bf16  node features, zero-padded
    w_ref:   (4, Fp, Fp) bf16  stacked Linear weights (fan_in, fan_out), padded
    b_ref:   (4, 1, Fp)  f32   stacked Linear biases, padded
    out_ref: (Np, Fp)    bf16  output (valid region: [:N, :h_feats])
    """
    a = a_ref[...]

    def gin_conv(h_bf16, w1, b1, w2, b2, eps):
        # GIN aggregation: (1 + eps) * x_i + sum_j x_j  (MXU, f32 accumulation)
        agg = jnp.dot(a, h_bf16, preferred_element_type=jnp.float32)
        pre = (1.0 + eps) * h_bf16.astype(jnp.float32) + agg
        # MLP: Linear -> ReLU -> Linear -> ReLU
        z = jnp.dot(pre.astype(jnp.bfloat16), w1,
                    preferred_element_type=jnp.float32) + b1
        z = jnp.maximum(z, 0.0)
        z = jnp.dot(z.astype(jnp.bfloat16), w2,
                    preferred_element_type=jnp.float32) + b2
        z = jnp.maximum(z, 0.0)
        return z

    h = gin_conv(x_ref[...], w_ref[0], b_ref[0], w_ref[1], b_ref[1], eps1)
    # F.relu between convs is a no-op (the MLP already ends with ReLU).
    h = gin_conv(h.astype(jnp.bfloat16), w_ref[2], b_ref[2], w_ref[3], b_ref[3],
                 eps2)
    out_ref[...] = h.astype(out_ref.dtype)


def _full(shape):
    # whole-array block; everything is small and VMEM-resident
    return pl.BlockSpec(shape, lambda i: (0,) * len(shape))


@functools.partial(jax.jit, static_argnames=("eps1", "eps2"))
def gin_forward_padded(a_pad, x_pad, w_stack, b_stack, *, eps1=0.0, eps2=0.0):
    """Runs the fused kernel on pre-padded / pre-cast inputs."""
    n_pad, f_pad = x_pad.shape
    kernel = functools.partial(_gin_forward_kernel, eps1=eps1, eps2=eps2)
    return pl.pallas_call(
        kernel,
        out_shape=jax.ShapeDtypeStruct((n_pad, f_pad), jnp.bfloat16),
        grid=(1,),
        in_specs=[_full(a_pad.shape), _full(x_pad.shape),
                  _full(w_stack.shape), _full(b_stack.shape)],
        out_specs=_full((n_pad, f_pad)),
        compiler_params=pltpu.CompilerParams(
            dimension_semantics=("arbitrary",),
            vmem_limit_bytes=32 * 1024 * 1024),
    )(a_pad, x_pad, w_stack, b_stack)


# ------------------- one-time preparation (outside forward) -----------------

def init_params(key, in_feats, h_feats):
    """PyTorch-Linear-style init; weights stored transposed as (fan_in, fan_out)."""
    def linear(k, fi, fo):
        k1, k2 = jax.random.split(k)
        bound = 1.0 / (fi ** 0.5)
        return {"w": jax.random.uniform(k1, (fi, fo), jnp.float32, -bound, bound),
                "b": jax.random.uniform(k2, (1, fo), jnp.float32, -bound, bound)}

    k1, k2, k3, k4 = jax.random.split(key, 4)
    return {
        "conv1": {"lin1": linear(k1, in_feats, h_feats),
                  "lin2": linear(k2, h_feats, h_feats)},
        "conv2": {"lin1": linear(k3, h_feats, h_feats),
                  "lin2": linear(k4, h_feats, h_feats)},
    }


def prepare_params(params):
    """Pad, cast, and stack the 4 Linear layers ONCE (not per forward)."""
    ws, bs = [], []
    for conv in ("conv1", "conv2"):
        for lin in ("lin1", "lin2"):
            p = params[conv][lin]
            ws.append(_pad2(p["w"], (FEAT_PAD, FEAT_PAD)).astype(jnp.bfloat16))
            bs.append(_pad2(p["b"], (1, FEAT_PAD)).astype(jnp.float32))
    return jnp.stack(ws), jnp.stack(bs)        # (4,128,128) bf16, (4,1,128) f32


def prepare_graph(x, edge_index, num_nodes):
    """Dense sum-aggregation adjacency + feature padding, ONCE per graph."""
    n_pad = max(_round_up(num_nodes, NODE_PAD), NODE_PAD)
    src, dst = edge_index[0], edge_index[1]
    a = jnp.zeros((n_pad, n_pad), jnp.float32).at[dst, src].add(1.0)
    x_pad = _pad2(x, (n_pad, FEAT_PAD))
    return a.astype(jnp.bfloat16), x_pad.astype(jnp.bfloat16)


# ---------------------------------- main ------------------------------------

if __name__ == "__main__":
    N = 16          # nodes
    IN_FEATS = 8
    HIDDEN = 32
    E = 48          # edges

    key = jax.random.PRNGKey(0)
    key, kx, ke_src, ke_dst, kp = jax.random.split(key, 5)

    x = jax.random.normal(kx, (N, IN_FEATS), jnp.float32)
    edge_index = jnp.stack([
        jax.random.randint(ke_src, (E,), 0, N, dtype=jnp.int32),
        jax.random.randint(ke_dst, (E,), 0, N, dtype=jnp.int32),
    ], axis=0)

    params = init_params(kp, IN_FEATS, HIDDEN)

    # one-time padding / casting / stacking (outside the per-forward path)
    w_stack, b_stack = prepare_params(params)
    a_pad, x_pad = prepare_graph(x, edge_index, N)

    out_pad = gin_forward_padded(a_pad, x_pad, w_stack, b_stack)
    out_pad = jax.block_until_ready(out_pad)

    out = out_pad[:N, :HIDDEN]   # valid region; slice stays outside the kernel
    assert out.shape == (N, HIDDEN), out.shape
    assert bool(jnp.all(jnp.isfinite(out.astype(jnp.float32))))
    print("KERNEL_OK")
</pallas_src>

<mosaic_0001>
module attributes {stable_mosaic.version = 11 : i64} {
  func.func @_gin_forward_kernel(%arg0: i32, %arg1: memref<128x128xbf16, #tpu.memory_space<vmem>>, %arg2: memref<128x128xbf16, #tpu.memory_space<vmem>>, %arg3: memref<4x128x128xbf16, #tpu.memory_space<vmem>>, %arg4: memref<4x1x128xf32, #tpu.memory_space<vmem>>, %arg5: memref<128x128xbf16, #tpu.memory_space<vmem>>) attributes {dimension_semantics = [#tpu.dimension_semantics<arbitrary>], iteration_bounds = array<i64: 1>, scalar_prefetch = 0 : i64, scratch_operands = 0 : i64, tpu.core_type = #tpu.core_type<tc>, window_params = [{pipeline_mode = #tpu.pipeline_mode<synchronous>, transform_indices = @transform_0, window_bounds = array<i64: 128, 128>}, {pipeline_mode = #tpu.pipeline_mode<synchronous>, transform_indices = @transform_1, window_bounds = array<i64: 128, 128>}, {pipeline_mode = #tpu.pipeline_mode<synchronous>, transform_indices = @transform_2, window_bounds = array<i64: 4, 128, 128>}, {pipeline_mode = #tpu.pipeline_mode<synchronous>, transform_indices = @transform_3, window_bounds = array<i64: 4, 1, 128>}, {pipeline_mode = #tpu.pipeline_mode<synchronous>, transform_indices = @transform_4, window_bounds = array<i64: 128, 128>}]} {
    %c0 = arith.constant 0 : index
    %c0_0 = arith.constant 0 : index
    %0 = vector.load %arg1[%c0, %c0_0] : memref<128x128xbf16, #tpu.memory_space<vmem>>, vector<128x128xbf16>
    %c0_1 = arith.constant 0 : index
    %c0_2 = arith.constant 0 : index
    %1 = vector.load %arg2[%c0_1, %c0_2] : memref<128x128xbf16, #tpu.memory_space<vmem>>, vector<128x128xbf16>
    %c0_3 = arith.constant 0 : index
    %c0_4 = arith.constant 0 : index
    %c0_5 = arith.constant 0 : index
    %2 = vector.load %arg3[%c0_3, %c0_4, %c0_5] : memref<4x128x128xbf16, #tpu.memory_space<vmem>>, vector<1x128x128xbf16>
    %3 = vector.shape_cast %2 : vector<1x128x128xbf16> to vector<128x128xbf16>
    %c0_6 = arith.constant 0 : index
    %c0_7 = arith.constant 0 : index
    %c0_8 = arith.constant 0 : index
    %4 = vector.load %arg4[%c0_6, %c0_7, %c0_8] : memref<4x1x128xf32, #tpu.memory_space<vmem>>, vector<1x1x128xf32>
    %5 = vector.shape_cast %4 : vector<1x1x128xf32> to vector<1x128xf32>
    %c1 = arith.constant 1 : index
    %c0_9 = arith.constant 0 : index
    %c0_10 = arith.constant 0 : index
    %6 = vector.load %arg3[%c1, %c0_9, %c0_10] : memref<4x128x128xbf16, #tpu.memory_space<vmem>>, vector<1x128x128xbf16>
    %7 = vector.shape_cast %6 : vector<1x128x128xbf16> to vector<128x128xbf16>
    %c1_11 = arith.constant 1 : index
    %c0_12 = arith.constant 0 : index
    %c0_13 = arith.constant 0 : index
    %8 = vector.load %arg4[%c1_11, %c0_12, %c0_13] : memref<4x1x128xf32, #tpu.memory_space<vmem>>, vector<1x1x128xf32>
    %9 = vector.shape_cast %8 : vector<1x1x128xf32> to vector<1x128xf32>
    %cst = arith.constant dense<0.000000e+00> : vector<128x128xf32>
    %10 = tpu.matmul %0, %1, %cst {dimension_numbers = #tpu.dot_dimension_numbers<[1], [0], [0], [1], [0, 0, 1, 1], [], []>} : vector<128x128xbf16>, vector<128x128xbf16>, vector<128x128xf32> -> vector<128x128xf32>
    %11 = arith.extf %1 : vector<128x128xbf16> to vector<128x128xf32>
    %cst_14 = arith.constant 1.000000e+00 : f32
    %12 = vector.broadcast %cst_14 : f32 to vector<128x128xf32>
    %13 = arith.mulf %12, %11 : vector<128x128xf32>
    %14 = arith.addf %13, %10 : vector<128x128xf32>
    %15 = arith.truncf %14 : vector<128x128xf32> to vector<128x128xbf16>
    %cst_15 = arith.constant dense<0.000000e+00> : vector<128x128xf32>
    %16 = tpu.matmul %15, %3, %cst_15 {dimension_numbers = #tpu.dot_dimension_numbers<[1], [0], [0], [1], [0, 0, 1, 1], [], []>} : vector<128x128xbf16>, vector<128x128xbf16>, vector<128x128xf32> -> vector<128x128xf32>
    %17 = vector.broadcast %5 : vector<1x128xf32> to vector<128x128xf32>
    %18 = arith.addf %16, %17 : vector<128x128xf32>
    %cst_16 = arith.constant 0.000000e+00 : f32
    %19 = vector.broadcast %cst_16 : f32 to vector<128x128xf32>
    %20 = arith.maximumf %18, %19 : vector<128x128xf32>
    %21 = arith.truncf %20 : vector<128x128xf32> to vector<128x128xbf16>
    %cst_17 = arith.constant dense<0.000000e+00> : vector<128x128xf32>
    %22 = tpu.matmul %21, %7, %cst_17 {dimension_numbers = #tpu.dot_dimension_numbers<[1], [0], [0], [1], [0, 0, 1, 1], [], []>} : vector<128x128xbf16>, vector<128x128xbf16>, vector<128x128xf32> -> vector<128x128xf32>
    %23 = vector.broadcast %9 : vector<1x128xf32> to vector<128x128xf32>
    %24 = arith.addf %22, %23 : vector<128x128xf32>
    %cst_18 = arith.constant 0.000000e+00 : f32
    %25 = vector.broadcast %cst_18 : f32 to vector<128x128xf32>
    %26 = arith.maximumf %24, %25 : vector<128x128xf32>
    %27 = arith.truncf %26 : vector<128x128xf32> to vector<128x128xbf16>
    %c2 = arith.constant 2 : index
    %c0_19 = arith.constant 0 : index
    %c0_20 = arith.constant 0 : index
    %28 = vector.load %arg3[%c2, %c0_19, %c0_20] : memref<4x128x128xbf16, #tpu.memory_space<vmem>>, vector<1x128x128xbf16>
    %29 = vector.shape_cast %28 : vector<1x128x128xbf16> to vector<128x128xbf16>
    %c2_21 = arith.constant 2 : index
    %c0_22 = arith.constant 0 : index
    %c0_23 = arith.constant 0 : index
    %30 = vector.load %arg4[%c2_21, %c0_22, %c0_23] : memref<4x1x128xf32, #tpu.memory_space<vmem>>, vector<1x1x128xf32>
    %31 = vector.shape_cast %30 : vector<1x1x128xf32> to vector<1x128xf32>
    %c3 = arith.constant 3 : index
    %c0_24 = arith.constant 0 : index
    %c0_25 = arith.constant 0 : index
    %32 = vector.load %arg3[%c3, %c0_24, %c0_25] : memref<4x128x128xbf16, #tpu.memory_space<vmem>>, vector<1x128x128xbf16>
    %33 = vector.shape_cast %32 : vector<1x128x128xbf16> to vector<128x128xbf16>
    %c3_26 = arith.constant 3 : index
    %c0_27 = arith.constant 0 : index
    %c0_28 = arith.constant 0 : index
    %34 = vector.load %arg4[%c3_26, %c0_27, %c0_28] : memref<4x1x128xf32, #tpu.memory_space<vmem>>, vector<1x1x128xf32>
    %35 = vector.shape_cast %34 : vector<1x1x128xf32> to vector<1x128xf32>
    %cst_29 = arith.constant dense<0.000000e+00> : vector<128x128xf32>
    %36 = tpu.matmul %0, %27, %cst_29 {dimension_numbers = #tpu.dot_dimension_numbers<[1], [0], [0], [1], [0, 0, 1, 1], [], []>} : vector<128x128xbf16>, vector<128x128xbf16>, vector<128x128xf32> -> vector<128x128xf32>
    %37 = arith.extf %27 : vector<128x128xbf16> to vector<128x128xf32>
    %cst_30 = arith.constant 1.000000e+00 : f32
    %38 = vector.broadcast %cst_30 : f32 to vector<128x128xf32>
    %39 = arith.mulf %38, %37 : vector<128x128xf32>
    %40 = arith.addf %39, %36 : vector<128x128xf32>
    %41 = arith.truncf %40 : vector<128x128xf32> to vector<128x128xbf16>
    %cst_31 = arith.constant dense<0.000000e+00> : vector<128x128xf32>
    %42 = tpu.matmul %41, %29, %cst_31 {dimension_numbers = #tpu.dot_dimension_numbers<[1], [0], [0], [1], [0, 0, 1, 1], [], []>} : vector<128x128xbf16>, vector<128x128xbf16>, vector<128x128xf32> -> vector<128x128xf32>
    %43 = vector.broadcast %31 : vector<1x128xf32> to vector<128x128xf32>
    %44 = arith.addf %42, %43 : vector<128x128xf32>
    %cst_32 = arith.constant 0.000000e+00 : f32
    %45 = vector.broadcast %cst_32 : f32 to vector<128x128xf32>
    %46 = arith.maximumf %44, %45 : vector<128x128xf32>
    %47 = arith.truncf %46 : vector<128x128xf32> to vector<128x128xbf16>
    %cst_33 = arith.constant dense<0.000000e+00> : vector<128x128xf32>
    %48 = tpu.matmul %47, %33, %cst_33 {dimension_numbers = #tpu.dot_dimension_numbers<[1], [0], [0], [1], [0, 0, 1, 1], [], []>} : vector<128x128xbf16>, vector<128x128xbf16>, vector<128x128xf32> -> vector<128x128xf32>
    %49 = vector.broadcast %35 : vector<1x128xf32> to vector<128x128xf32>
    %50 = arith.addf %48, %49 : vector<128x128xf32>
    %cst_34 = arith.constant 0.000000e+00 : f32
    %51 = vector.broadcast %cst_34 : f32 to vector<128x128xf32>
    %52 = arith.maximumf %50, %51 : vector<128x128xf32>
    %53 = arith.truncf %52 : vector<128x128xf32> to vector<128x128xbf16>
    %c0_35 = arith.constant 0 : index
    %c0_36 = arith.constant 0 : index
    %54 = vector.load %arg5[%c0_35, %c0_36] : memref<128x128xbf16, #tpu.memory_space<vmem>>, vector<128x128xbf16>
    tpu.vector_store %arg5[%c0_35, %c0_36], %53 {strides = array<i32>} : memref<128x128xbf16, #tpu.memory_space<vmem>>, vector<128x128xbf16>,
    return
  }
  func.func @transform_0(%arg0: i32) -> (i32, i32) {
    %c0_i32 = arith.constant 0 : i32
    %c0_i32_0 = arith.constant 0 : i32
    %c0_i32_1 = arith.constant 0 : i32
    return %c0_i32, %c0_i32_0 : i32, i32
  }
  func.func @transform_1(%arg0: i32) -> (i32, i32) {
    %c0_i32 = arith.constant 0 : i32
    %c0_i32_0 = arith.constant 0 : i32
    %c0_i32_1 = arith.constant 0 : i32
    return %c0_i32, %c0_i32_0 : i32, i32
  }
  func.func @transform_2(%arg0: i32) -> (i32, i32, i32) {
    %c0_i32 = arith.constant 0 : i32
    %c0_i32_0 = arith.constant 0 : i32
    %c0_i32_1 = arith.constant 0 : i32
    %c0_i32_2 = arith.constant 0 : i32
    return %c0_i32, %c0_i32_0, %c0_i32_1 : i32, i32, i32
  }
  func.func @transform_3(%arg0: i32) -> (i32, i32, i32) {
    %c0_i32 = arith.constant 0 : i32
    %c0_i32_0 = arith.constant 0 : i32
    %c0_i32_1 = arith.constant 0 : i32
    %c0_i32_2 = arith.constant 0 : i32
    return %c0_i32, %c0_i32_0, %c0_i32_1 : i32, i32, i32
  }
  func.func @transform_4(%arg0: i32) -> (i32, i32) {
    %c0_i32 = arith.constant 0 : i32
    %c0_i32_0 = arith.constant 0 : i32
    %c0_i32_1 = arith.constant 0 : i32
    return %c0_i32, %c0_i32_0 : i32, i32
  }
}

</mosaic_0001>

<bundles_post_ra>
// kernel: gin_forward_padded.1
= control target key start
LH: loop header
LB: loop body
LE: loop exit
PB: predicated region body
PF: predicated region fallthrough
CT: control target
= control target key end

     0   :  { %9 = vsyncpa [#allocation3], 0  ;;  %s2142_s0 = inlined_call_operand.hbm [shape: bf16[128,128], index: 0, kind: input, shape index: {}]   ;;  %s2143_s1 = inlined_call_operand.hbm [shape: bf16[128,128], index: 1, kind: input, shape index: {}]   ;;  %s2144_s2 = inlined_call_operand.hbm [shape: bf16[4,128,128], index: 2, kind: input, shape index: {}]   ;;  %s2145_s3 = inlined_call_operand.vmem [shape: f32[4,1,128], index: 3, kind: input, shape index: {}]   ;;  %s2146_s4 = inlined_call_operand.hbm [shape: bf16[128,128], index: 4, kind: output, shape index: {}]  }
   0x1   :  { %10 = vsyncpa [#allocation6], 0 }
   0x2   :  { %11 = vsyncpa [#allocation4], 0  ;;  %s1904_s15 = smov [#allocation5]   ;;  %s1905_s17 = smov [#allocation2]  }
   0x3   :  { %s29_s16 = sshll.u32 %s1904_s15, 4  ;;  %s17_s18 = sshll.u32 %s1905_s17, 4  ;;  %s30_s16 = int_to_ptr.vmem [resolvable:$true] %s29_s16  ;;  %s1935_s18 = int_to_ptr.vmem [resolvable:$true] %s17_s18 }
   0x4   :  { %s1810_s21 = scalar_lea.hbm %s2143_s1, 1024 }
   0x5   :  { %p1811_p0 = scmp.ne.s32.totalorder %s2143_s1, %s1810_s21  ;;  %p1814_p1 = scmp.lt.u32.totalorder %s1810_s21, %s2143_s1 }
   0x7   :  { %p1816_p2 = pnand %p1814_p1, %p1811_p0 }
   0x9   :  { %1819 = shalt.err (!%p1816_p2)
}
   0xa   :  { %s1820_s26 = scalar_lea.vmem %s30_s16, 1024  ;;  %p1825_p4 = scmp.lt.s32.totalorder %s30_s16, %s30_s16 }
   0xb   :  { %p1821_p3 = scmp.ne.s32.totalorder %s30_s16, %s1820_s26  ;;  %p1826_p5 = scmp.lt.s32.totalorder %s1820_s26, %s1820_s26 }
   0xd   :  { %p1827_p6 = por %p1826_p5, %p1825_p4 }
   0xf   :  { %p1828_p7 = pnand %p1827_p6, %p1821_p3 }
  0x11   :  { %1831 = shalt.err (!%p1828_p7)
}
  0x12   :  { %s1906_s27 = smov 64   ;;  %s1907_s28 = smov 4  }
  0x13   :  { %35 = dma.hbm_to_vmem [thread:$0]  %s2143_s1, 1024, %s30_s16, [#allocation6], %s1906_s27, %s1906_s27, %s1907_s28  }
  0x14   :  { %s1832_s7 = scalar_lea.hbm %s2142_s0, 1024 }
  0x15   :  { %p1833_p8 = scmp.ne.s32.totalorder %s2142_s0, %s1832_s7  ;;  %p1836_p9 = scmp.lt.u32.totalorder %s1832_s7, %s2142_s0 }
  0x17   :  { %p1838_p10 = pnand %p1836_p9, %p1833_p8 }
  0x19   :  { %1841 = shalt.err (!%p1838_p10)
}
  0x1a   :  { %s1842_s12 = scalar_lea.vmem %s1935_s18, 1024  ;;  %p1847_p12 = scmp.lt.s32.totalorder %s1935_s18, %s1935_s18 }
  0x1b   :  { %p1843_p11 = scmp.ne.s32.totalorder %s1935_s18, %s1842_s12  ;;  %p1848_p13 = scmp.lt.s32.totalorder %s1842_s12, %s1842_s12 }
  0x1d   :  { %p1849_p0 = por %p1848_p13, %p1847_p12 }
  0x1f   :  { %p1850_p1 = pnand %p1849_p0, %p1843_p11 }
  0x21   :  { %1853 = shalt.err (!%p1850_p1)
}
  0x22   :  { %23 = dma.hbm_to_vmem [thread:$0]  %s2142_s0, 1024, %s1935_s18, [#allocation3], %s1906_s27, %s1906_s27, %s1907_s28  }
  0x23   :  { %s1908_s14 = smov [#allocation7]   ;;  %s1854_s19 = scalar_lea.hbm %s2144_s2, 4096 }
  0x24   :  { %s41_s15 = sshll.u32 %s1908_s14, 4  ;;  %p1855_p2 = scmp.ne.s32.totalorder %s2144_s2, %s1854_s19  ;;  %s42_s15 = int_to_ptr.vmem [resolvable:$true] %s41_s15 }
  0x25   :  { %p1858_p3 = scmp.lt.u32.totalorder %s1854_s19, %s2144_s2 }
  0x27   :  { %p1860_p4 = pnand %p1858_p3, %p1855_p2 }
  0x29   :  { %1863 = shalt.err (!%p1860_p4)
}
  0x2a   :  { %s1864_s24 = scalar_lea.vmem %s42_s15, 4096  ;;  %p1869_p6 = scmp.lt.s32.totalorder %s42_s15, %s42_s15 }
  0x2b   :  { %p1865_p5 = scmp.ne.s32.totalorder %s42_s15, %s1864_s24  ;;  %p1870_p7 = scmp.lt.s32.totalorder %s1864_s24, %s1864_s24 }
  0x2d   :  { %p1871_p8 = por %p1870_p7, %p1869_p6 }
  0x2f   :  { %p1872_p9 = pnand %p1871_p8, %p1865_p5 }
  0x31   :  { %1875 = shalt.err (!%p1872_p9)
}
  0x32   :  { %47 = dma.hbm_to_vmem [thread:$0]  %s2144_s2, 4096, %s42_s15, [#allocation6], %s1906_s27, %s1906_s27, %s1907_s28  }
  0x33   :  { %1898 = dma.done.wait [#allocation3], 1024  }
  0x34   :  { %1899 = vsyncadd [#allocation3], 4294966272 }
  0x35   :  { %1900 = dma.done.wait [#allocation6], 5120  }
  0x36   :  { %1901 = vsyncadd [#allocation6], 4294962176  ;;  %v1987_v0 = vld [vmem:[#allocation5] sm:$0xff]   ;;  %v1989_v1 = vld [vmem:[#allocation5 + $0x8] sm:$0xff]  }
  0x37   :  { %v1991_v2 = vld [vmem:[#allocation5 + $0x10] sm:$0xff]   ;;  %1556 = vmatprep.subr.bf16.mxu0 %v1987_v0  ;;  %v1994_v3 = vld [vmem:[#allocation2] sm:$0xff]   ;;  %v1999_v4 = vld [vmem:[#allocation5 + $0x18] sm:$0xff]   ;;  %v323_v30 = vunpack.c.l.bf16 %v1989_v1  ;;  %v324_v31 = vunpack.c.h.bf16 %v1989_v1  ;;  %v321_v33 = vunpack.c.l.bf16 %v1987_v0  ;;  %v322_v34 = vunpack.c.h.bf16 %v1987_v0 }
  0x38   :  { %1557 = vmatpush3.bf16.msra.mxu0 %v1987_v0  ;;  %1572 = vmatprep.mubr.bf16.mxu0 %v1994_v3  ;;  %v2003_v5 = vld [vmem:[#allocation5 + $0x20] sm:$0xff]   ;;  %v1771_v7 = vld [vmem:[#allocation7 + $0x8] sm:$0xff]   ;;  %v1772_v9 = vld [vmem:[#allocation7 + $0x10] sm:$0xff]   ;;  %v327_v44 = vunpack.c.l.bf16 %v1999_v4  ;;  %v328_v45 = vunpack.c.h.bf16 %v1999_v4  ;;  %v325_v47 = vunpack.c.l.bf16 %v1991_v2  ;;  %v326_v48 = vunpack.c.h.bf16 %v1991_v2 }
  0x39   :  { %1558 = vmatprep.subr.bf16.mxu0 %v1989_v1  ;;  %v1770_v6 = vld [vmem:[#allocation7] sm:$0xff]   ;;  %v2007_v8 = vld [vmem:[#allocation5 + $0x28] sm:$0xff]   ;;  %v2010_v10 = vld [vmem:[#allocation5 + $0x30] sm:$0xff]   ;;  %v329_v61 = vunpack.c.l.bf16 %v2003_v5  ;;  %v330_v62 = vunpack.c.h.bf16 %v2003_v5 }
  0x3a   :  { %1588 = vmatprep.subr.bf16.mxu1 %v1770_v6  ;;  %v1773_v11 = vld [vmem:[#allocation7 + $0x18] sm:$0xff]   ;;  %v1774_v13 = vld [vmem:[#allocation7 + $0x20] sm:$0xff]   ;;  %v1775_v14 = vld [vmem:[#allocation7 + $0x28] sm:$0xff]   ;;  %v331_v58 = vunpack.c.l.bf16 %v2007_v8  ;;  %v332_v59 = vunpack.c.h.bf16 %v2007_v8 }
  0x3b   :  { %1589 = vmatpush3.bf16.msra.mxu1 %v1770_v6  ;;  %v2014_v12 = vld [vmem:[#allocation5 + $0x38] sm:$0xff]   ;;  %v2021_v15 = vld [vmem:[#allocation2 + $0x8] sm:$0xff]   ;;  %v2023_v16 = vld [vmem:[#allocation2 + $0x10] sm:$0xff]  }
  0x3c   :  { %1559 = vmatpush3.bf16.msra.mxu0 %v1989_v1  ;;  %1590 = vmatprep.subr.bf16.mxu1 %v1771_v7  ;;  %v2028_v17 = vld [vmem:[#allocation2 + $0x18] sm:$0xff]   ;;  %v2030_v18 = vld [vmem:[#allocation2 + $0x20] sm:$0xff]   ;;  %v2034_v19 = vld [vmem:[#allocation2 + $0x28] sm:$0xff]  }
  0x3d   :  { %1560 = vmatprep.subr.bf16.mxu0 %v1991_v2  ;;  %v2036_v20 = vld [vmem:[#allocation2 + $0x30] sm:$0xff]   ;;  %v2040_v21 = vld [vmem:[#allocation2 + $0x38] sm:$0xff]   ;;  %v1778_v24 = vld [vmem:[#allocation7 + $0x40] sm:$0xff]  }
  0x3e   :  { %v1776_v22 = vld [vmem:[#allocation7 + $0x30] sm:$0xff]   ;;  %v1777_v23 = vld [vmem:[#allocation7 + $0x38] sm:$0xff]   ;;  %v1779_v25 = vld [vmem:[#allocation7 + $0x48] sm:$0xff]  }
  0x3f   :  { %1591 = vmatpush3.bf16.msra.mxu1 %v1771_v7  ;;  %v1780_v26 = vld [vmem:[#allocation7 + $0x50] sm:$0xff]   ;;  %v1781_v27 = vld [vmem:[#allocation7 + $0x58] sm:$0xff]   ;;  %v1782_v28 = vld [vmem:[#allocation7 + $0x60] sm:$0xff]  }
  0x40   :  { %1561 = vmatpush3.bf16.msra.mxu0 %v1991_v2  ;;  %1592 = vmatprep.subr.bf16.mxu1 %v1772_v9  ;;  %v1783_v29 = vld [vmem:[#allocation7 + $0x68] sm:$0xff]  }
  0x41   :  { %1562 = vmatprep.subr.bf16.mxu0 %v1999_v4 }
  0x43   :  { %1593 = vmatpush3.bf16.msra.mxu1 %v1772_v9 }
  0x44   :  { %1563 = vmatpush3.bf16.msra.mxu0 %v1999_v4  ;;  %1594 = vmatprep.subr.bf16.mxu1 %v1773_v11 }
  0x45   :  { %1564 = vmatprep.subr.bf16.mxu0 %v2003_v5 }
  0x47   :  { %1595 = vmatpush3.bf16.msra.mxu1 %v1773_v11 }
  0x48   :  { %1565 = vmatpush3.bf16.msra.mxu0 %v2003_v5  ;;  %1596 = vmatprep.subr.bf16.mxu1 %v1774_v13  ;;  %v334_v5 = vunpack.c.h.bf16 %v2010_v10 }
  0x49   :  { %1566 = vmatprep.subr.bf16.mxu0 %v2007_v8 }
  0x4b   :  { %1597 = vmatpush3.bf16.msra.mxu1 %v1774_v13  ;;  %v335_v13 = vunpack.c.l.bf16 %v2014_v12 }
  0x4c   :  { %1567 = vmatpush3.bf16.msra.mxu0 %v2007_v8  ;;  %1598 = vmatprep.subr.bf16.mxu1 %v1775_v14  ;;  %v336_v8 = vunpack.c.h.bf16 %v2014_v12 }
  0x4d   :  { %1568 = vmatprep.subr.bf16.mxu0 %v2010_v10 }
  0x4f   :  { %1599 = vmatpush3.bf16.msra.mxu1 %v1775_v14 }
  0x50   :  { %1569 = vmatpush3.bf16.msra.mxu0 %v2010_v10  ;;  %1600 = vmatprep.subr.bf16.mxu1 %v1776_v22 }
  0x51   :  { %1570 = vmatprep.subr.bf16.mxu0 %v2014_v12 }
  0x53   :  { %1601 = vmatpush3.bf16.msra.mxu1 %v1776_v22  ;;  %v333_v22 = vunpack.c.l.bf16 %v2010_v10  ;;  %v1343_v10 = vld [vmem:[%s2145_s3] ss:$0 sm:$0xff] }
  0x54   :  { %1571 = vmatpush3.bf16.msra.mxu0 %v2014_v12  ;;  %1602 = vmatprep.subr.bf16.mxu1 %v1777_v23  ;;  %v1784_v12 = vld [vmem:[#allocation7 + $0x70] sm:$0xff]  }
  0x55   :  { %1620 = vmatprep.subr.bf16.mxu0 %v1778_v24 }
  0x57   :  { %1573 = vmatmul.mubr.bf16.vlgmr.msra.gmra.mrb[0].mxu0 %v2021_v15  ;;  %1603 = vmatpush3.bf16.msra.mxu1 %v1777_v23 }
  0x58   :  { %1576 = vmatprep.mubr.bf16.mxu0 %v2023_v16  ;;  %1621 = vmatpush3.bf16.msra.mxu0 %v1778_v24 }
  0x59   :  { %1622 = vmatprep.subr.bf16.mxu0 %v1779_v25 }
  0x5c   :  { %1623 = vmatpush3.bf16.msra.mxu0 %v1779_v25 }
  0x5d   :  { %1624 = vmatprep.subr.bf16.mxu0 %v1780_v26 }
  0x5f   :  { %1577 = vmatmul.mubr.bf16.gmra.mrb[4].mxu0 %v2028_v17 }
  0x60   :  { %1580 = vmatprep.mubr.bf16.mxu0 %v2030_v18  ;;  %1625 = vmatpush3.bf16.msra.mxu0 %v1780_v26 }
  0x61   :  { %1626 = vmatprep.subr.bf16.mxu0 %v1781_v27 }
  0x64   :  { %1627 = vmatpush3.bf16.msra.mxu0 %v1781_v27 }
  0x65   :  { %1628 = vmatprep.subr.bf16.mxu0 %v1782_v28 }
  0x67   :  { %1581 = vmatmul.mubr.bf16.gmra.mrb[8].mxu0 %v2034_v19 }
  0x68   :  { %1584 = vmatprep.mubr.bf16.mxu0 %v2036_v20  ;;  %1629 = vmatpush3.bf16.msra.mxu0 %v1782_v28 }
  0x69   :  { %1630 = vmatprep.subr.bf16.mxu0 %v1783_v29 }
  0x6c   :  { %1631 = vmatpush3.bf16.msra.mxu0 %v1783_v29 }
  0x6d   :  { %1632 = vmatprep.subr.bf16.mxu0 %v1784_v12 }
  0x6f   :  { %1585 = vmatmul.mubr.bf16.gmra.mrb[12].mxu0 %v2040_v21 }
  0x70   :  { %1633 = vmatpush3.bf16.msra.mxu0 %v1784_v12 }
 0x12a   :  { %v1574_v32 = vpop.f32.mrb[0].mxu0 }
 0x12b   :  { %v258_v35 = vpop.f32.mrb[1].mxu0  ;;  %v339_v37 = vadd.f32 %v1574_v32, %v323_v30  ;;  %v1785_v32 = vld [vmem:[#allocation7 + $0x78] sm:$0xff]  }
 0x12c   :  { %v1575_v36 = vpop.f32.mrb[2].mxu0  ;;  %v337_v40 = vadd.f32 %v321_v33, %v258_v35  ;;  %1634 = vmatprep.subr.bf16.mxu0 %v1785_v32 }
 0x12d   :  { %v340_v38 = vadd.f32 %v1575_v36, %v324_v31  ;;  %v261_v39 = vpop.f32.mrb[3].mxu0  ;;  %1635 = vmatpush3.bf16.msra.mxu0 %v1785_v32 }
 0x12e   :  { %v338_v41 = vadd.f32 %v322_v34, %v261_v39 }
 0x12f   :  { %v354_v42 = vpack.c.bf16 %v340_v38, %v339_v37 }
 0x130   :  { %v353_v43 = vpack.c.bf16 %v338_v41, %v337_v40 }
 0x132   :  { %v1578_v46 = vpop.f32.mrb[4].mxu0  ;;  %1604 = vmatprep.mubr.bf16.mxu1 %v353_v43 }
 0x133   :  { %v274_v49 = vpop.f32.mrb[5].mxu0  ;;  %1605 = vmatmul.mubr.bf16.vlgmr.msra.gmra.mrb[0].mxu1 %v354_v42  ;;  %v343_v51 = vadd.f32 %v1578_v46, %v327_v44 }
 0x134   :  { %v1579_v50 = vpop.f32.mrb[6].mxu0  ;;  %v341_v54 = vadd.f32 %v325_v47, %v274_v49 }
 0x135   :  { %v344_v52 = vadd.f32 %v1579_v50, %v328_v45  ;;  %v277_v53 = vpop.f32.mrb[7].mxu0 }
 0x136   :  { %v342_v55 = vadd.f32 %v326_v48, %v277_v53 }
 0x137   :  { %v356_v56 = vpack.c.bf16 %v344_v52, %v343_v51 }
 0x138   :  { %v355_v57 = vpack.c.bf16 %v342_v55, %v341_v54 }
 0x13a   :  { %v1582_v60 = vpop.f32.mrb[8].mxu0  ;;  %1608 = vmatprep.mubr.bf16.mxu1 %v355_v57 }
 0x13b   :  { %v290_v63 = vpop.f32.mrb[9].mxu0  ;;  %1609 = vmatmul.mubr.bf16.gmra.mrb[4].mxu1 %v356_v56  ;;  %v347_v1 = vadd.f32 %v1582_v60, %v331_v58 }
 0x13c   :  { %v1583_v0 = vpop.f32.mrb[10].mxu0  ;;  %v345_v6 = vadd.f32 %v329_v61, %v290_v63 }
 0x13d   :  { %v348_v2 = vadd.f32 %v1583_v0, %v332_v59  ;;  %v293_v4 = vpop.f32.mrb[11].mxu0 }
 0x13e   :  { %v346_v7 = vadd.f32 %v330_v62, %v293_v4 }
 0x13f   :  { %v358_v9 = vpack.c.bf16 %v348_v2, %v347_v1 }
 0x140   :  { %v357_v11 = vpack.c.bf16 %v346_v7, %v345_v6 }
 0x142   :  { %v1586_v14 = vpop.f32.mrb[12].mxu0  ;;  %1612 = vmatprep.mubr.bf16.mxu1 %v357_v11 }
 0x143   :  { %v306_v23 = vpop.f32.mrb[13].mxu0  ;;  %1613 = vmatmul.mubr.bf16.gmra.mrb[8].mxu1 %v358_v9  ;;  %v351_v25 = vadd.f32 %v1586_v14, %v335_v13 }
 0x144   :  { %v1587_v24 = vpop.f32.mrb[14].mxu0  ;;  %v349_v28 = vadd.f32 %v333_v22, %v306_v23 }
 0x145   :  { %v352_v26 = vadd.f32 %v1587_v24, %v336_v8  ;;  %v309_v27 = vpop.f32.mrb[15].mxu0 }
 0x146   :  { %v350_v29 = vadd.f32 %v334_v5, %v309_v27 }
 0x147   :  { %v360_v30 = vpack.c.bf16 %v352_v26, %v351_v25 }
 0x148   :  { %v359_v31 = vpack.c.bf16 %v350_v29, %v349_v28 }
 0x14a   :  { %1616 = vmatprep.mubr.bf16.mxu1 %v359_v31 }
 0x14b   :  { %1617 = vmatmul.mubr.bf16.gmra.mrb[12].mxu1 %v360_v30 }
 0x14c   :  { %1668 = vmatprep.mubr.bf16.mxu1 %v1994_v3 }
 0x206   :  { %v1606_v33 = vpop.f32.mrb[0].mxu1 }
 0x207   :  { %v458_v34 = vadd.f32 %v1606_v33, %v1343_v10  ;;  %v449_v35 = vpop.f32.mrb[1].mxu1  ;;  %v1786_v33 = vld [vmem:[#allocation7 + $0x80] sm:$0xff]  }
 0x208   :  { %v450_v36 = vadd.f32 %v1343_v10, %v449_v35  ;;  %v1607_v37 = vpop.f32.mrb[2].mxu1  ;;  %1684 = vmatprep.subr.bf16.mxu0 %v1786_v33  ;;  %v1788_v35 = vld [vmem:[#allocation7 + $0x90] sm:$0xff]  }
 0x209   :  { %v461_v38 = vadd.f32 %v1607_v37, %v1343_v10  ;;  %v452_v39 = vpop.f32.mrb[3].mxu1  ;;  %v514_v41 = vmax.f32 %v458_v34, 0.0  ;;  %v1787_v34 = vld [vmem:[#allocation7 + $0x88] sm:$0xff]  }
 0x20a   :  { %v453_v40 = vadd.f32 %v1343_v10, %v452_v39  ;;  %v512_v42 = vmax.f32 %v450_v36, 0.0  ;;  %v1789_v36 = vld [vmem:[#allocation7 + $0x98] sm:$0xff]   ;;  %v1791_v37 = vld [vmem:[#allocation7 + $0xa8] sm:$0xff]  }
 0x20b   :  { %v515_v3 = vmax.f32 %v461_v38, 0.0  ;;  %v1352_v38 = vld [vmem:[%s2145_s3 + $0x1] ss:$0 sm:$0xff] }
 0x20c   :  { %v513_v43 = vmax.f32 %v453_v40, 0.0 }
 0x20d   :  { %v529_v44 = vpack.c.bf16 %v515_v3, %v514_v41 }
 0x20e   :  { %v528_v45 = vpack.c.bf16 %v513_v43, %v512_v42  ;;  %v1610_v46 = vpop.f32.mrb[4].mxu1 }
 0x20f   :  { %v474_v47 = vadd.f32 %v1610_v46, %v1343_v10  ;;  %v465_v48 = vpop.f32.mrb[5].mxu1 }
 0x210   :  { %v466_v49 = vadd.f32 %v1343_v10, %v465_v48  ;;  %v1611_v50 = vpop.f32.mrb[6].mxu1  ;;  %1636 = vmatprep.mubr.bf16.mxu0 %v528_v45 }
 0x211   :  { %v477_v51 = vadd.f32 %v1611_v50, %v1343_v10  ;;  %v468_v52 = vpop.f32.mrb[7].mxu1  ;;  %1637 = vmatmul.mubr.bf16.vlgmr.msra.gmra.mrb[16].mxu0 %v529_v44  ;;  %v518_v54 = vmax.f32 %v474_v47, 0.0 }
 0x212   :  { %v469_v53 = vadd.f32 %v1343_v10, %v468_v52  ;;  %v516_v56 = vmax.f32 %v466_v49, 0.0  ;;  %1685 = vmatpush3.bf16.msra.mxu0 %v1786_v33 }
 0x213   :  { %v519_v55 = vmax.f32 %v477_v51, 0.0  ;;  %1686 = vmatprep.subr.bf16.mxu0 %v1787_v34 }
 0x214   :  { %v517_v57 = vmax.f32 %v469_v53, 0.0 }
 0x215   :  { %v531_v58 = vpack.c.bf16 %v519_v55, %v518_v54 }
 0x216   :  { %v530_v59 = vpack.c.bf16 %v517_v57, %v516_v56  ;;  %v1614_v60 = vpop.f32.mrb[8].mxu1  ;;  %1687 = vmatpush3.bf16.msra.mxu0 %v1787_v34 }
 0x217   :  { %v490_v61 = vadd.f32 %v1614_v60, %v1343_v10  ;;  %v481_v62 = vpop.f32.mrb[9].mxu1  ;;  %1688 = vmatprep.subr.bf16.mxu0 %v1788_v35 }
 0x218   :  { %v482_v63 = vadd.f32 %v1343_v10, %v481_v62  ;;  %v1615_v0 = vpop.f32.mrb[10].mxu1  ;;  %1640 = vmatprep.mubr.bf16.mxu0 %v530_v59 }
 0x219   :  { %v493_v1 = vadd.f32 %v1615_v0, %v1343_v10  ;;  %v484_v2 = vpop.f32.mrb[11].mxu1  ;;  %1641 = vmatmul.mubr.bf16.gmra.mrb[20].mxu0 %v531_v58  ;;  %v522_v6 = vmax.f32 %v490_v61, 0.0 }
 0x21a   :  { %v485_v4 = vadd.f32 %v1343_v10, %v484_v2  ;;  %v520_v9 = vmax.f32 %v482_v63, 0.0  ;;  %1689 = vmatpush3.bf16.msra.mxu0 %v1788_v35 }
 0x21b   :  { %v523_v7 = vmax.f32 %v493_v1, 0.0  ;;  %1690 = vmatprep.subr.bf16.mxu0 %v1789_v36 }
 0x21c   :  { %v521_v11 = vmax.f32 %v485_v4, 0.0 }
 0x21d   :  { %v533_v13 = vpack.c.bf16 %v523_v7, %v522_v6 }
 0x21e   :  { %v532_v8 = vpack.c.bf16 %v521_v11, %v520_v9  ;;  %v1618_v14 = vpop.f32.mrb[12].mxu1  ;;  %1691 = vmatpush3.bf16.msra.mxu0 %v1789_v36 }
 0x21f   :  { %v506_v22 = vadd.f32 %v1618_v14, %v1343_v10  ;;  %v497_v5 = vpop.f32.mrb[13].mxu1 }
 0x220   :  { %v498_v23 = vadd.f32 %v1343_v10, %v497_v5  ;;  %v1619_v24 = vpop.f32.mrb[14].mxu1  ;;  %1644 = vmatprep.mubr.bf16.mxu0 %v532_v8 }
 0x221   :  { %v509_v25 = vadd.f32 %v1619_v24, %v1343_v10  ;;  %v500_v26 = vpop.f32.mrb[15].mxu1  ;;  %1645 = vmatmul.mubr.bf16.gmra.mrb[24].mxu0 %v533_v13  ;;  %v526_v28 = vmax.f32 %v506_v22, 0.0 }
 0x222   :  { %v501_v27 = vadd.f32 %v1343_v10, %v500_v26  ;;  %v524_v30 = vmax.f32 %v498_v23, 0.0  ;;  %v1790_v10 = vld [vmem:[#allocation7 + $0xa0] sm:$0xff]  }
 0x223   :  { %v527_v29 = vmax.f32 %v509_v25, 0.0  ;;  %1692 = vmatprep.subr.bf16.mxu0 %v1790_v10 }
 0x224   :  { %v525_v31 = vmax.f32 %v501_v27, 0.0  ;;  %1693 = vmatpush3.bf16.msra.mxu0 %v1790_v10 }
 0x225   :  { %v535_v12 = vpack.c.bf16 %v527_v29, %v526_v28  ;;  %1694 = vmatprep.subr.bf16.mxu0 %v1791_v37 }
 0x226   :  { %v534_v32 = vpack.c.bf16 %v525_v31, %v524_v30 }
 0x228   :  { %1648 = vmatprep.mubr.bf16.mxu0 %v534_v32  ;;  %1695 = vmatpush3.bf16.msra.mxu0 %v1791_v37 }
 0x229   :  { %1649 = vmatmul.mubr.bf16.gmra.mrb[28].mxu0 %v535_v12 }
 0x2e4   :  { %v1638_v39 = vpop.f32.mrb[16].mxu0 }
 0x2e5   :  { %v633_v40 = vadd.f32 %v1638_v39, %v1352_v38  ;;  %v624_v41 = vpop.f32.mrb[17].mxu0  ;;  %v1793_v39 = vld [vmem:[#allocation7 + $0xb8] sm:$0xff]  }
 0x2e6   :  { %v625_v3 = vadd.f32 %v1352_v38, %v624_v41  ;;  %v1639_v42 = vpop.f32.mrb[18].mxu0 }
 0x2e7   :  { %v636_v43 = vadd.f32 %v1639_v42, %v1352_v38  ;;  %v627_v44 = vpop.f32.mrb[19].mxu0  ;;  %v689_v46 = vmax.f32 %v633_v40, 0.0  ;;  %v1794_v40 = vld [vmem:[#allocation7 + $0xc0] sm:$0xff]  }
 0x2e8   :  { %v628_v45 = vadd.f32 %v1352_v38, %v627_v44  ;;  %v687_v48 = vmax.f32 %v625_v3, 0.0 }
 0x2e9   :  { %v690_v47 = vmax.f32 %v636_v43, 0.0 }
 0x2ea   :  { %v688_v49 = vmax.f32 %v628_v45, 0.0 }
 0x2eb   :  { %v2066_v50 = vpack.c.bf16 %v690_v47, %v689_v46 }
 0x2ec   :  { %v2068_v51 = vpack.c.bf16 %v688_v49, %v687_v48  ;;  %v1642_v52 = vpop.f32.mrb[20].mxu0 }
 0x2ed   :  { %v649_v53 = vadd.f32 %v1642_v52, %v1352_v38  ;;  %v640_v54 = vpop.f32.mrb[21].mxu0  ;;  %v849_v43 = vunpack.c.h.bf16 %v2066_v50 }
 0x2ee   :  { %v641_v55 = vadd.f32 %v1352_v38, %v640_v54  ;;  %v1643_v56 = vpop.f32.mrb[22].mxu0  ;;  %1652 = vmatprep.subr.bf16.mxu1 %v2068_v51  ;;  %v846_v41 = vunpack.c.l.bf16 %v2068_v51  ;;  %v847_v46 = vunpack.c.h.bf16 %v2068_v51 }
 0x2ef   :  { %v652_v57 = vadd.f32 %v1643_v56, %v1352_v38  ;;  %v643_v58 = vpop.f32.mrb[23].mxu0  ;;  %1653 = vmatpush3.bf16.msra.mxu1 %v2068_v51  ;;  %v693_v60 = vmax.f32 %v649_v53, 0.0 }
 0x2f0   :  { %v644_v59 = vadd.f32 %v1352_v38, %v643_v58  ;;  %1654 = vmatprep.subr.bf16.mxu1 %v2066_v50  ;;  %v691_v62 = vmax.f32 %v641_v55, 0.0 }
 0x2f1   :  { %v694_v61 = vmax.f32 %v652_v57, 0.0 }
 0x2f2   :  { %v692_v63 = vmax.f32 %v644_v59, 0.0 }
 0x2f3   :  { %v2073_v0 = vpack.c.bf16 %v694_v61, %v693_v60  ;;  %1655 = vmatpush3.bf16.msra.mxu1 %v2066_v50 }
 0x2f4   :  { %v2076_v1 = vpack.c.bf16 %v692_v63, %v691_v62  ;;  %v1646_v2 = vpop.f32.mrb[24].mxu0 }
 0x2f5   :  { %v665_v4 = vadd.f32 %v1646_v2, %v1352_v38  ;;  %v656_v6 = vpop.f32.mrb[25].mxu0  ;;  %v852_v54 = vunpack.c.l.bf16 %v2073_v0 }
 0x2f6   :  { %v657_v7 = vadd.f32 %v1352_v38, %v656_v6  ;;  %v1647_v9 = vpop.f32.mrb[26].mxu0  ;;  %1656 = vmatprep.subr.bf16.mxu1 %v2076_v1  ;;  %v850_v56 = vunpack.c.l.bf16 %v2076_v1  ;;  %v851_v51 = vunpack.c.h.bf16 %v2076_v1 }
 0x2f7   :  { %v668_v11 = vadd.f32 %v1647_v9, %v1352_v38  ;;  %v659_v13 = vpop.f32.mrb[27].mxu0  ;;  %1657 = vmatpush3.bf16.msra.mxu1 %v2076_v1  ;;  %v697_v14 = vmax.f32 %v665_v4, 0.0 }
 0x2f8   :  { %v660_v8 = vadd.f32 %v1352_v38, %v659_v13  ;;  %1658 = vmatprep.subr.bf16.mxu1 %v2073_v0  ;;  %v695_v5 = vmax.f32 %v657_v7, 0.0 }
 0x2f9   :  { %v698_v22 = vmax.f32 %v668_v11, 0.0 }
 0x2fa   :  { %v696_v23 = vmax.f32 %v660_v8, 0.0 }
 0x2fb   :  { %v2081_v24 = vpack.c.bf16 %v698_v22, %v697_v14  ;;  %1659 = vmatpush3.bf16.msra.mxu1 %v2073_v0 }
 0x2fc   :  { %v2084_v25 = vpack.c.bf16 %v696_v23, %v695_v5  ;;  %v1650_v26 = vpop.f32.mrb[28].mxu0 }
 0x2fd   :  { %v681_v27 = vadd.f32 %v1650_v26, %v1352_v38  ;;  %v672_v28 = vpop.f32.mrb[29].mxu0  ;;  %v856_v6 = vunpack.c.l.bf16 %v2081_v24 }
 0x2fe   :  { %v673_v29 = vadd.f32 %v1352_v38, %v672_v28  ;;  %v1651_v30 = vpop.f32.mrb[30].mxu0  ;;  %1660 = vmatprep.subr.bf16.mxu1 %v2084_v25  ;;  %v854_v9 = vunpack.c.l.bf16 %v2084_v25  ;;  %v855_v1 = vunpack.c.h.bf16 %v2084_v25 }
 0x2ff   :  { %v684_v31 = vadd.f32 %v1651_v30, %v1352_v38  ;;  %v675_v12 = vpop.f32.mrb[31].mxu0  ;;  %1661 = vmatpush3.bf16.msra.mxu1 %v2084_v25  ;;  %v701_v33 = vmax.f32 %v681_v27, 0.0 }
 0x300   :  { %v676_v32 = vadd.f32 %v1352_v38, %v675_v12  ;;  %1662 = vmatprep.subr.bf16.mxu1 %v2081_v24  ;;  %v699_v35 = vmax.f32 %v673_v29, 0.0  ;;  %v1792_v38 = vld [vmem:[#allocation7 + $0xb0] sm:$0xff]  }
 0x301   :  { %v702_v34 = vmax.f32 %v684_v31, 0.0  ;;  %1696 = vmatprep.subr.bf16.mxu0 %v1792_v38 }
 0x302   :  { %v700_v36 = vmax.f32 %v676_v32, 0.0  ;;  %1697 = vmatpush3.bf16.msra.mxu0 %v1792_v38 }
 0x303   :  { %v2089_v10 = vpack.c.bf16 %v702_v34, %v701_v33  ;;  %1663 = vmatpush3.bf16.msra.mxu1 %v2081_v24  ;;  %1698 = vmatprep.subr.bf16.mxu0 %v1793_v39 }
 0x304   :  { %v2092_v37 = vpack.c.bf16 %v700_v36, %v699_v35 }
 0x305   :  { %v860_v28 = vunpack.c.l.bf16 %v2089_v10 }
 0x306   :  { %1664 = vmatprep.subr.bf16.mxu1 %v2092_v37  ;;  %1699 = vmatpush3.bf16.msra.mxu0 %v1793_v39  ;;  %v858_v30 = vunpack.c.l.bf16 %v2092_v37  ;;  %v859_v25 = vunpack.c.h.bf16 %v2092_v37 }
 0x307   :  { %1665 = vmatpush3.bf16.msra.mxu1 %v2092_v37 }
 0x308   :  { %1666 = vmatprep.subr.bf16.mxu1 %v2089_v10 }
 0x30b   :  { %1667 = vmatpush3.bf16.msra.mxu1 %v2089_v10 }
 0x30c   :  { %1716 = vmatprep.subr.bf16.mxu1 %v1794_v40 }
 0x30e   :  { %1669 = vmatmul.mubr.bf16.vlgmr.msra.gmra.mrb[16].mxu1 %v2021_v15  ;;  %v1795_v15 = vld [vmem:[#allocation7 + $0xc8] sm:$0xff]  }
 0x30f   :  { %1672 = vmatprep.mubr.bf16.mxu1 %v2023_v16  ;;  %1717 = vmatpush3.bf16.msra.mxu1 %v1794_v40  ;;  %v1796_v16 = vld [vmem:[#allocation7 + $0xd0] sm:$0xff]  }
 0x310   :  { %1718 = vmatprep.subr.bf16.mxu1 %v1795_v15  ;;  %v1800_v40 = vld [vmem:[#allocation7 + $0xf0] sm:$0xff]  }
 0x313   :  { %1719 = vmatpush3.bf16.msra.mxu1 %v1795_v15  ;;  %v1801_v15 = vld [vmem:[#allocation7 + $0xf8] sm:$0xff]  }
 0x314   :  { %1720 = vmatprep.subr.bf16.mxu1 %v1796_v16 }
 0x316   :  { %1673 = vmatmul.mubr.bf16.gmra.mrb[20].mxu1 %v2028_v17  ;;  %v1797_v17 = vld [vmem:[#allocation7 + $0xd8] sm:$0xff]  }
 0x317   :  { %1676 = vmatprep.mubr.bf16.mxu1 %v2030_v18  ;;  %1721 = vmatpush3.bf16.msra.mxu1 %v1796_v16  ;;  %v1798_v18 = vld [vmem:[#allocation7 + $0xe0] sm:$0xff]  }
 0x318   :  { %1722 = vmatprep.subr.bf16.mxu1 %v1797_v17 }
 0x31b   :  { %1723 = vmatpush3.bf16.msra.mxu1 %v1797_v17 }
 0x31c   :  { %1724 = vmatprep.subr.bf16.mxu1 %v1798_v18 }
 0x31e   :  { %1677 = vmatmul.mubr.bf16.gmra.mrb[24].mxu1 %v2034_v19  ;;  %v1799_v19 = vld [vmem:[#allocation7 + $0xe8] sm:$0xff]  }
 0x31f   :  { %1680 = vmatprep.mubr.bf16.mxu1 %v2036_v20  ;;  %1725 = vmatpush3.bf16.msra.mxu1 %v1798_v18  ;;  %v848_v20 = vunpack.c.l.bf16 %v2066_v50  ;;  %v853_v50 = vunpack.c.h.bf16 %v2073_v0  ;;  %v857_v0 = vunpack.c.h.bf16 %v2081_v24  ;;  %v861_v24 = vunpack.c.h.bf16 %v2089_v10  ;;  %v1363_v10 = vld [vmem:[%s2145_s3 + $0x2] ss:$0 sm:$0xff] }
 0x320   :  { %1726 = vmatprep.subr.bf16.mxu1 %v1799_v19 }
 0x323   :  { %1727 = vmatpush3.bf16.msra.mxu1 %v1799_v19 }
 0x324   :  { %1728 = vmatprep.subr.bf16.mxu1 %v1800_v40 }
 0x326   :  { %1681 = vmatmul.mubr.bf16.gmra.mrb[28].mxu1 %v2040_v21 }
 0x327   :  { %1729 = vmatpush3.bf16.msra.mxu1 %v1800_v40 }
 0x328   :  { %1730 = vmatprep.subr.bf16.mxu1 %v1801_v15 }
 0x32b   :  { %1731 = vmatpush3.bf16.msra.mxu1 %v1801_v15 }
 0x3e1   :  { %v1670_v21 = vpop.f32.mrb[16].mxu1 }
 0x3e2   :  { %v864_v3 = vadd.f32 %v1670_v21, %v848_v20  ;;  %v783_v42 = vpop.f32.mrb[17].mxu1 }
 0x3e3   :  { %v862_v44 = vadd.f32 %v846_v41, %v783_v42  ;;  %v1671_v45 = vpop.f32.mrb[18].mxu1 }
 0x3e4   :  { %v865_v47 = vadd.f32 %v1671_v45, %v849_v43  ;;  %v786_v48 = vpop.f32.mrb[19].mxu1 }
 0x3e5   :  { %v863_v49 = vadd.f32 %v847_v46, %v786_v48 }
 0x3e6   :  { %v879_v52 = vpack.c.bf16 %v865_v47, %v864_v3 }
 0x3e7   :  { %v878_v53 = vpack.c.bf16 %v863_v49, %v862_v44 }
 0x3e9   :  { %v1674_v55 = vpop.f32.mrb[20].mxu1  ;;  %1700 = vmatprep.mubr.bf16.mxu0 %v878_v53 }
 0x3ea   :  { %v868_v57 = vadd.f32 %v1674_v55, %v852_v54  ;;  %v799_v58 = vpop.f32.mrb[21].mxu1  ;;  %1701 = vmatmul.mubr.bf16.vlgmr.msra.gmra.mrb[32].mxu0 %v879_v52 }
 0x3eb   :  { %v866_v59 = vadd.f32 %v850_v56, %v799_v58  ;;  %v1675_v60 = vpop.f32.mrb[22].mxu1 }
 0x3ec   :  { %v869_v61 = vadd.f32 %v1675_v60, %v853_v50  ;;  %v802_v62 = vpop.f32.mrb[23].mxu1 }
 0x3ed   :  { %v867_v63 = vadd.f32 %v851_v51, %v802_v62 }
 0x3ee   :  { %v881_v2 = vpack.c.bf16 %v869_v61, %v868_v57 }
 0x3ef   :  { %v880_v4 = vpack.c.bf16 %v867_v63, %v866_v59 }
 0x3f1   :  { %v1678_v7 = vpop.f32.mrb[24].mxu1  ;;  %1704 = vmatprep.mubr.bf16.mxu0 %v880_v4 }
 0x3f2   :  { %v872_v11 = vadd.f32 %v1678_v7, %v856_v6  ;;  %v815_v13 = vpop.f32.mrb[25].mxu1  ;;  %1705 = vmatmul.mubr.bf16.gmra.mrb[36].mxu0 %v881_v2 }
 0x3f3   :  { %v870_v8 = vadd.f32 %v854_v9, %v815_v13  ;;  %v1679_v14 = vpop.f32.mrb[26].mxu1 }
 0x3f4   :  { %v873_v22 = vadd.f32 %v1679_v14, %v857_v0  ;;  %v818_v5 = vpop.f32.mrb[27].mxu1 }
 0x3f5   :  { %v871_v23 = vadd.f32 %v855_v1, %v818_v5 }
 0x3f6   :  { %v883_v26 = vpack.c.bf16 %v873_v22, %v872_v11 }
 0x3f7   :  { %v882_v27 = vpack.c.bf16 %v871_v23, %v870_v8 }
 0x3f9   :  { %v1682_v29 = vpop.f32.mrb[28].mxu1  ;;  %1708 = vmatprep.mubr.bf16.mxu0 %v882_v27 }
 0x3fa   :  { %v876_v31 = vadd.f32 %v1682_v29, %v860_v28  ;;  %v831_v12 = vpop.f32.mrb[29].mxu1  ;;  %1709 = vmatmul.mubr.bf16.gmra.mrb[40].mxu0 %v883_v26 }
 0x3fb   :  { %v874_v32 = vadd.f32 %v858_v30, %v831_v12  ;;  %v1683_v33 = vpop.f32.mrb[30].mxu1 }
 0x3fc   :  { %v877_v34 = vadd.f32 %v1683_v33, %v861_v24  ;;  %v834_v35 = vpop.f32.mrb[31].mxu1 }
 0x3fd   :  { %v875_v36 = vadd.f32 %v859_v25, %v834_v35 }
 0x3fe   :  { %v885_v38 = vpack.c.bf16 %v877_v34, %v876_v31  ;;  %v1372_v34 = vld [vmem:[%s2145_s3 + $0x3] ss:$0 sm:$0xff]  ;;  %s1909_s3 = smov [#allocation8]  }
 0x3ff   :  { %v884_v39 = vpack.c.bf16 %v875_v36, %v874_v32  ;;  %s1313_s8 = sshll.u32 %s1909_s3, 4  ;;  %s1314_s8 = int_to_ptr.vmem [resolvable:$true] %s1313_s8 }
 0x400   :  { %s1876_s9 = scalar_lea.vmem %s1314_s8, 1024  ;;  %p1881_p11 = scmp.lt.s32.totalorder %s1314_s8, %s1314_s8 }
 0x401   :  { %1712 = vmatprep.mubr.bf16.mxu0 %v884_v39  ;;  %p1877_p10 = scmp.ne.s32.totalorder %s1314_s8, %s1876_s9  ;;  %p1882_p12 = scmp.lt.s32.totalorder %s1876_s9, %s1876_s9 }
 0x402   :  { %1713 = vmatmul.mubr.bf16.gmra.mrb[44].mxu0 %v885_v38 }
 0x403   :  { %p1883_p13 = por %p1882_p12, %p1881_p11 }
 0x405   :  { %p1884_p0 = pnand %p1883_p13, %p1877_p10 }
 0x4bd   :  { %v1702_v16 = vpop.f32.mrb[32].mxu0 }
 0x4be   :  { %v983_v17 = vadd.f32 %v1702_v16, %v1363_v10  ;;  %v974_v37 = vpop.f32.mrb[33].mxu0 }
 0x4bf   :  { %v975_v18 = vadd.f32 %v1363_v10, %v974_v37  ;;  %v1703_v19 = vpop.f32.mrb[34].mxu0 }
 0x4c0   :  { %v986_v20 = vadd.f32 %v1703_v19, %v1363_v10  ;;  %v977_v21 = vpop.f32.mrb[35].mxu0  ;;  %v1039_v3 = vmax.f32 %v983_v17, 0.0 }
 0x4c1   :  { %v978_v41 = vadd.f32 %v1363_v10, %v977_v21  ;;  %v1037_v43 = vmax.f32 %v975_v18, 0.0 }
 0x4c2   :  { %v1040_v42 = vmax.f32 %v986_v20, 0.0 }
 0x4c3   :  { %v1038_v44 = vmax.f32 %v978_v41, 0.0 }
 0x4c4   :  { %v1054_v45 = vpack.c.bf16 %v1040_v42, %v1039_v3 }
 0x4c5   :  { %v1053_v46 = vpack.c.bf16 %v1038_v44, %v1037_v43  ;;  %v1706_v47 = vpop.f32.mrb[36].mxu0 }
 0x4c6   :  { %v999_v48 = vadd.f32 %v1706_v47, %v1363_v10  ;;  %v990_v49 = vpop.f32.mrb[37].mxu0 }
 0x4c7   :  { %v991_v52 = vadd.f32 %v1363_v10, %v990_v49  ;;  %v1707_v53 = vpop.f32.mrb[38].mxu0  ;;  %1732 = vmatprep.mubr.bf16.mxu1 %v1053_v46 }
 0x4c8   :  { %v1002_v54 = vadd.f32 %v1707_v53, %v1363_v10  ;;  %v993_v55 = vpop.f32.mrb[39].mxu0  ;;  %1733 = vmatmul.mubr.bf16.vlgmr.msra.gmra.mrb[32].mxu1 %v1054_v45  ;;  %v1043_v57 = vmax.f32 %v999_v48, 0.0 }
 0x4c9   :  { %v994_v56 = vadd.f32 %v1363_v10, %v993_v55  ;;  %v1041_v50 = vmax.f32 %v991_v52, 0.0 }
 0x4ca   :  { %v1044_v58 = vmax.f32 %v1002_v54, 0.0 }
 0x4cb   :  { %v1042_v59 = vmax.f32 %v994_v56, 0.0 }
 0x4cc   :  { %v1056_v60 = vpack.c.bf16 %v1044_v58, %v1043_v57 }
 0x4cd   :  { %v1055_v51 = vpack.c.bf16 %v1042_v59, %v1041_v50  ;;  %v1710_v61 = vpop.f32.mrb[40].mxu0 }
 0x4ce   :  { %v1015_v62 = vadd.f32 %v1710_v61, %v1363_v10  ;;  %v1006_v63 = vpop.f32.mrb[41].mxu0 }
 0x4cf   :  { %v1007_v2 = vadd.f32 %v1363_v10, %v1006_v63  ;;  %v1711_v4 = vpop.f32.mrb[42].mxu0  ;;  %1736 = vmatprep.mubr.bf16.mxu1 %v1055_v51 }
 0x4d0   :  { %v1018_v6 = vadd.f32 %v1711_v4, %v1363_v10  ;;  %v1009_v7 = vpop.f32.mrb[43].mxu0  ;;  %1737 = vmatmul.mubr.bf16.gmra.mrb[36].mxu1 %v1056_v60  ;;  %v1047_v11 = vmax.f32 %v1015_v62, 0.0 }
 0x4d1   :  { %v1010_v9 = vadd.f32 %v1363_v10, %v1009_v7  ;;  %v1045_v0 = vmax.f32 %v1007_v2, 0.0 }
 0x4d2   :  { %v1048_v13 = vmax.f32 %v1018_v6, 0.0 }
 0x4d3   :  { %v1046_v8 = vmax.f32 %v1010_v9, 0.0 }
 0x4d4   :  { %v1058_v14 = vpack.c.bf16 %v1048_v13, %v1047_v11 }
 0x4d5   :  { %v1057_v1 = vpack.c.bf16 %v1046_v8, %v1045_v0  ;;  %v1714_v22 = vpop.f32.mrb[44].mxu0 }
 0x4d6   :  { %v1031_v5 = vadd.f32 %v1714_v22, %v1363_v10  ;;  %v1022_v23 = vpop.f32.mrb[45].mxu0 }
 0x4d7   :  { %v1023_v26 = vadd.f32 %v1363_v10, %v1022_v23  ;;  %v1715_v27 = vpop.f32.mrb[46].mxu0  ;;  %1740 = vmatprep.mubr.bf16.mxu1 %v1057_v1 }
 0x4d8   :  { %v1034_v28 = vadd.f32 %v1715_v27, %v1363_v10  ;;  %v1025_v29 = vpop.f32.mrb[47].mxu0  ;;  %1741 = vmatmul.mubr.bf16.gmra.mrb[40].mxu1 %v1058_v14  ;;  %v1051_v31 = vmax.f32 %v1031_v5, 0.0 }
 0x4d9   :  { %v1026_v30 = vadd.f32 %v1363_v10, %v1025_v29  ;;  %v1049_v24 = vmax.f32 %v1023_v26, 0.0 }
 0x4da   :  { %v1052_v12 = vmax.f32 %v1034_v28, 0.0 }
 0x4db   :  { %v1050_v32 = vmax.f32 %v1026_v30, 0.0 }
 0x4dc   :  { %v1060_v33 = vpack.c.bf16 %v1052_v12, %v1051_v31 }
 0x4dd   :  { %v1059_v25 = vpack.c.bf16 %v1050_v32, %v1049_v24 }
 0x4df   :  { %1744 = vmatprep.mubr.bf16.mxu1 %v1059_v25 }
 0x4e0   :  { %1745 = vmatmul.mubr.bf16.gmra.mrb[44].mxu1 %v1060_v33 }
 0x59b   :  { %v1734_v35 = vpop.f32.mrb[32].mxu1 }
 0x59c   :  { %v1158_v36 = vadd.f32 %v1734_v35, %v1372_v34  ;;  %v1149_v38 = vpop.f32.mrb[33].mxu1 }
 0x59d   :  { %v1150_v39 = vadd.f32 %v1372_v34, %v1149_v38  ;;  %v1735_v40 = vpop.f32.mrb[34].mxu1 }
 0x59e   :  { %v1161_v15 = vadd.f32 %v1735_v40, %v1372_v34  ;;  %v1152_v16 = vpop.f32.mrb[35].mxu1  ;;  %v1214_v17 = vmax.f32 %v1158_v36, 0.0 }
 0x59f   :  { %v1153_v10 = vadd.f32 %v1372_v34, %v1152_v16  ;;  %v1212_v18 = vmax.f32 %v1150_v39, 0.0 }
 0x5a0   :  { %v1215_v37 = vmax.f32 %v1161_v15, 0.0 }
 0x5a1   :  { %v1213_v19 = vmax.f32 %v1153_v10, 0.0 }
 0x5a2   :  { %v1421_v20 = vpack.c.bf16 %v1215_v37, %v1214_v17 }
 0x5a3   :  { %v1416_v21 = vpack.c.bf16 %v1213_v19, %v1212_v18  ;;  %v1738_v41 = vpop.f32.mrb[36].mxu1 }
 0x5a4   :  { %1453 = vst [vmem:[#allocation8 + $0x8] sm:$0xff] %v1421_v20   ;;  %v1174_v3 = vadd.f32 %v1738_v41, %v1372_v34  ;;  %v1165_v42 = vpop.f32.mrb[37].mxu1 }
 0x5a5   :  { %1417 = vst [vmem:[#allocation8] sm:$0xff] %v1416_v21   ;;  %v1166_v43 = vadd.f32 %v1372_v34, %v1165_v42  ;;  %v1739_v44 = vpop.f32.mrb[38].mxu1 }
 0x5a6   :  { %v1177_v45 = vadd.f32 %v1739_v44, %v1372_v34  ;;  %v1168_v46 = vpop.f32.mrb[39].mxu1  ;;  %v1218_v48 = vmax.f32 %v1174_v3, 0.0 }
 0x5a7   :  { %v1169_v47 = vadd.f32 %v1372_v34, %v1168_v46  ;;  %v1216_v52 = vmax.f32 %v1166_v43, 0.0 }
 0x5a8   :  { %v1219_v49 = vmax.f32 %v1177_v45, 0.0 }
 0x5a9   :  { %v1217_v53 = vmax.f32 %v1169_v47, 0.0 }
 0x5aa   :  { %v1431_v54 = vpack.c.bf16 %v1219_v49, %v1218_v48 }
 0x5ab   :  { %v1426_v55 = vpack.c.bf16 %v1217_v53, %v1216_v52  ;;  %v1742_v56 = vpop.f32.mrb[40].mxu1 }
 0x5ac   :  { %1455 = vst [vmem:[#allocation8 + $0x18] sm:$0xff] %v1431_v54   ;;  %v1190_v57 = vadd.f32 %v1742_v56, %v1372_v34  ;;  %v1181_v58 = vpop.f32.mrb[41].mxu1 }
 0x5ad   :  { %1454 = vst [vmem:[#allocation8 + $0x10] sm:$0xff] %v1426_v55   ;;  %v1182_v50 = vadd.f32 %v1372_v34, %v1181_v58  ;;  %v1743_v59 = vpop.f32.mrb[42].mxu1 }
 0x5ae   :  { %v1193_v60 = vadd.f32 %v1743_v59, %v1372_v34  ;;  %v1184_v51 = vpop.f32.mrb[43].mxu1  ;;  %v1222_v62 = vmax.f32 %v1190_v57, 0.0 }
 0x5af   :  { %v1185_v61 = vadd.f32 %v1372_v34, %v1184_v51  ;;  %v1220_v2 = vmax.f32 %v1182_v50, 0.0 }
 0x5b0   :  { %v1223_v63 = vmax.f32 %v1193_v60, 0.0 }
 0x5b1   :  { %v1221_v4 = vmax.f32 %v1185_v61, 0.0 }
 0x5b2   :  { %v1441_v6 = vpack.c.bf16 %v1223_v63, %v1222_v62 }
 0x5b3   :  { %v1436_v7 = vpack.c.bf16 %v1221_v4, %v1220_v2  ;;  %v1746_v9 = vpop.f32.mrb[44].mxu1 }
 0x5b4   :  { %1457 = vst [vmem:[#allocation8 + $0x28] sm:$0xff] %v1441_v6   ;;  %v1206_v11 = vadd.f32 %v1746_v9, %v1372_v34  ;;  %v1197_v13 = vpop.f32.mrb[45].mxu1 }
 0x5b5   :  { %1456 = vst [vmem:[#allocation8 + $0x20] sm:$0xff] %v1436_v7   ;;  %v1198_v0 = vadd.f32 %v1372_v34, %v1197_v13  ;;  %v1747_v8 = vpop.f32.mrb[46].mxu1 }
 0x5b6   :  { %v1209_v14 = vadd.f32 %v1747_v8, %v1372_v34  ;;  %v1200_v1 = vpop.f32.mrb[47].mxu1  ;;  %v1226_v5 = vmax.f32 %v1206_v11, 0.0 }
 0x5b7   :  { %v1201_v22 = vadd.f32 %v1372_v34, %v1200_v1  ;;  %v1224_v26 = vmax.f32 %v1198_v0, 0.0 }
 0x5b8   :  { %v1227_v23 = vmax.f32 %v1209_v14, 0.0 }
 0x5b9   :  { %v1225_v27 = vmax.f32 %v1201_v22, 0.0 }
 0x5ba   :  { %v1451_v28 = vpack.c.bf16 %v1227_v23, %v1226_v5 }
 0x5bb   :  { %v1446_v29 = vpack.c.bf16 %v1225_v27, %v1224_v26 }
 0x5bc   :  { %1459 = vst [vmem:[#allocation8 + $0x38] sm:$0xff] %v1451_v28  }
 0x5bd   :  { %1458 = vst [vmem:[#allocation8 + $0x30] sm:$0xff] %v1446_v29  }
 0x5be   :  { %1887 = shalt.err (!%p1884_p0)
}
 0x5bf   :  { %s1888_s12 = scalar_lea.hbm %s2146_s4, 1024 }
 0x5c0   :  { %p1889_p1 = scmp.ne.s32.totalorder %s2146_s4, %s1888_s12  ;;  %p1892_p2 = scmp.lt.u32.totalorder %s1888_s12, %s2146_s4 }
 0x5c2   :  { %p1894_p3 = pnand %p1892_p2, %p1889_p1 }
 0x5c4   :  { %1897 = shalt.err (!%p1894_p3)
}
 0x5c5   :  { %1319 = dma.vmem_to_hbm [thread:$0]  %s1314_s8, 1024, %s2146_s4, [#allocation4], %s1906_s27, %s1906_s27, %s1907_s28  }
 0x5c6   :  { %1902 = dma.done.wait [#allocation4], 1024  }
 0x5c7   :  { %1903 = vsyncadd [#allocation4], 4294966272 }
 0x5c8   :  { %1323 = vsyncpa [#allocation3], 1 }
 0x5c9   :  { %1324 = vsyncpa [#allocation6], 1 }
 0x5ca   :  { %1325 = vsyncpa [#allocation4], 1 }

</bundles_post_ra>
